<compile_context>
chip_gen: v7x
topology: tpu7x:2x2x1
jax: 0.10.0
libtpu: 0.0.40
codegen_flags: <defaults>
</compile_context>

<pallas_src>
import functools

import jax
import jax.numpy as jnp
from jax.experimental import pallas as pl
from jax.experimental.pallas import tpu as pltpu


def _convlstm_kernel(x_ref, w_ref, b_ref, c_prev_ref, hidden_ref, cell_ref, *, Hd):
    """One (batch, spatial-tile) grid step, all in (channel, spatial) layout.

    x_ref:      (1, K*K*Ct, Mt)  im2col patches, (ky,kx,c)-major x spatial
    w_ref:      (4*Hd, K*K*Ct)   conv weights (constant index_map -> fetched once)
    b_ref:      (4*Hd, 1)        conv bias (f32)
    c_prev_ref: (1, Hd, Mt)      previous cell state (f32)
    hidden_ref: (1, Hd, Mt)      output hidden state
    cell_ref:   (1, Hd, Mt)      output cell state
    """
    # Single deep-contraction MXU matmul with f32 accumulation; bias folded in
    # via one lane-broadcast add (no separate full gate pass needed).
    gates = jnp.dot(w_ref[...], x_ref[0], preferred_element_type=jnp.float32)
    gates = gates + b_ref[...]                               # (4*Hd, Mt)

    # PyTorch chunk(4, dim=1) order: in, remember(forget), out, cell(g).
    # Sublane slices at multiples of Hd; every op below is full-lane width.
    in_gate = jax.nn.sigmoid(gates[0 * Hd:1 * Hd, :])
    rem_gate = jax.nn.sigmoid(gates[1 * Hd:2 * Hd, :])
    out_gate = jax.nn.sigmoid(gates[2 * Hd:3 * Hd, :])
    cell_gate = jnp.tanh(gates[3 * Hd:4 * Hd, :])

    cell = rem_gate * c_prev_ref[0] + in_gate * cell_gate
    hidden = out_gate * jnp.tanh(cell)

    cell_ref[0] = cell.astype(cell_ref.dtype)
    hidden_ref[0] = hidden.astype(hidden_ref.dtype)


def conv_lstm_2d(input_nchw, weight_oihw, bias, prev_state=None, *,
                 hidden_size, kernel_size=3, matmul_dtype=jnp.bfloat16):
    """Forward pass matching ConvLSTM2d.forward.

    input_nchw:  (B, C_in, H, W)  float32
    weight_oihw: (4*hidden, C_in + hidden, K, K)
    bias:        (4*hidden,)
    prev_state:  optional (hidden, cell), each (B, hidden, H, W)
    Returns (hidden, cell), each (B, hidden, H, W).
    """
    B, C_in, H, W = input_nchw.shape
    Hd = hidden_size
    K = kernel_size
    assert K % 2 == 1, "padding=(K-1)//2 only reproduces 'same' for odd K"
    pad = (K - 1) // 2
    Ct = C_in + Hd
    M = H * W
    KKCt = K * K * Ct

    if prev_state is None:
        prev_hidden = jnp.zeros((B, Hd, H, W), dtype=input_nchw.dtype)
        prev_cell = jnp.zeros((B, Hd, H, W), dtype=input_nchw.dtype)
    else:
        prev_hidden, prev_cell = prev_state

    # ---- wrapper glue (pure XLA, all in native NCHW; no transposes) ----
    stacked = jnp.concatenate([input_nchw, prev_hidden], axis=1)    # (B, Ct, H, W)
    xpad = jnp.pad(stacked, ((0, 0), (0, 0), (pad, pad), (pad, pad)))

    # im2col in gate-transposed layout:
    #   x_col[b, (ky*K + kx)*Ct + c, h*W + w] = xpad[b, c, h+ky, w+kx]
    patches = [xpad[:, :, ky:ky + H, kx:kx + W].reshape(B, Ct, M)
               for ky in range(K) for kx in range(K)]
    x_col = jnp.concatenate(patches, axis=1).astype(matmul_dtype)   # (B, KKCt, M)

    # OIHW -> (4*Hd, K*K*Ct), matching x_col's (ky, kx, c) ordering.
    w2d = jnp.transpose(weight_oihw, (0, 2, 3, 1)).reshape(4 * Hd, KKCt)
    w2d = w2d.astype(matmul_dtype)
    b2d = bias.reshape(4 * Hd, 1).astype(jnp.float32)

    # prev_cell / outputs stay in flattened-NCHW (B, Hd, H*W): free reshapes.
    c_prev = prev_cell.reshape(B, Hd, M).astype(jnp.float32)

    # Spatial tile: 128 lanes when possible (lane-dense stores, acc = 16 vregs),
    # fall back to the full spatial extent for odd shapes.
    Mt = 128 if M % 128 == 0 else M
    grid = (B, M // Mt)

    kernel = functools.partial(_convlstm_kernel, Hd=Hd)

    hidden_f, cell_f = pl.pallas_call(
        kernel,
        out_shape=(
            jax.ShapeDtypeStruct((B, Hd, M), input_nchw.dtype),
            jax.ShapeDtypeStruct((B, Hd, M), input_nchw.dtype),
        ),
        grid_spec=pltpu.PrefetchScalarGridSpec(
            num_scalar_prefetch=0,
            grid=grid,
            in_specs=[
                pl.BlockSpec((1, KKCt, Mt), lambda b, m: (b, 0, m)),
                pl.BlockSpec((4 * Hd, KKCt), lambda b, m: (0, 0)),
                pl.BlockSpec((4 * Hd, 1), lambda b, m: (0, 0)),
                pl.BlockSpec((1, Hd, Mt), lambda b, m: (b, 0, m)),
            ],
            out_specs=[
                pl.BlockSpec((1, Hd, Mt), lambda b, m: (b, 0, m)),
                pl.BlockSpec((1, Hd, Mt), lambda b, m: (b, 0, m)),
            ],
        ),
        compiler_params=pltpu.CompilerParams(
            dimension_semantics=("parallel", "parallel")),
    )(x_col, w2d, b2d, c_prev)

    hidden = hidden_f.reshape(B, Hd, H, W)
    cell = cell_f.reshape(B, Hd, H, W)
    return hidden, cell


def _reference(input_nchw, weight_oihw, bias, prev_state, hidden_size, K=3):
    """Pure-JAX reference (lax conv) for correctness checking."""
    B, C_in, H, W = input_nchw.shape
    Hd = hidden_size
    if prev_state is None:
        ph = jnp.zeros((B, Hd, H, W), input_nchw.dtype)
        pc = jnp.zeros((B, Hd, H, W), input_nchw.dtype)
    else:
        ph, pc = prev_state
    stacked = jnp.concatenate([input_nchw, ph], axis=1)
    pad = (K - 1) // 2
    gates = jax.lax.conv_general_dilated(
        stacked, weight_oihw, window_strides=(1, 1),
        padding=((pad, pad), (pad, pad)),
        dimension_numbers=("NCHW", "OIHW", "NCHW"))
    gates = gates + bias.reshape(1, -1, 1, 1)
    i, f, o, g = jnp.split(gates, 4, axis=1)
    i = jax.nn.sigmoid(i)
    f = jax.nn.sigmoid(f)
    o = jax.nn.sigmoid(o)
    g = jnp.tanh(g)
    cell = f * pc + i * g
    hidden = o * jnp.tanh(cell)
    return hidden, cell


if __name__ == "__main__":
    B, C_in, H, W = 2, 4, 16, 16
    HIDDEN = 32
    K = 3

    key = jax.random.PRNGKey(0)
    kx_, kw_, kb_, kh_, kc_ = jax.random.split(key, 5)

    x = jax.random.normal(kx_, (B, C_in, H, W), dtype=jnp.float32)
    fan_in = (C_in + HIDDEN) * K * K
    bound = 1.0 / (fan_in ** 0.5)
    weight = jax.random.uniform(
        kw_, (4 * HIDDEN, C_in + HIDDEN, K, K),
        minval=-bound, maxval=bound, dtype=jnp.float32)
    bias = jax.random.uniform(
        kb_, (4 * HIDDEN,), minval=-bound, maxval=bound, dtype=jnp.float32)

    prev_hidden = jax.random.normal(kh_, (B, HIDDEN, H, W), dtype=jnp.float32)
    prev_cell = jax.random.normal(kc_, (B, HIDDEN, H, W), dtype=jnp.float32)

    # Default fast path: bf16 MXU operands, f32 accumulation + gate math.
    hidden, cell = conv_lstm_2d(
        x, weight, bias, prev_state=(prev_hidden, prev_cell),
        hidden_size=HIDDEN, kernel_size=K)
    jax.block_until_ready((hidden, cell))

    h_ref, c_ref = _reference(x, weight, bias, (prev_hidden, prev_cell), HIDDEN, K)
    assert float(jnp.max(jnp.abs(hidden - h_ref))) < 5e-2, "hidden mismatch (bf16)"
    assert float(jnp.max(jnp.abs(cell - c_ref))) < 5e-2, "cell mismatch (bf16)"

    # Full-precision path: f32 MXU operands -> tight tolerance vs lax.conv ref.
    h32, c32 = conv_lstm_2d(
        x, weight, bias, prev_state=(prev_hidden, prev_cell),
        hidden_size=HIDDEN, kernel_size=K, matmul_dtype=jnp.float32)
    jax.block_until_ready((h32, c32))
    assert jnp.allclose(h32, h_ref, atol=1e-5, rtol=1e-5), "hidden mismatch (f32)"
    assert jnp.allclose(c32, c_ref, atol=1e-5, rtol=1e-5), "cell mismatch (f32)"

    # prev_state=None (zero state) path, like the PyTorch forward.
    h0, c0 = conv_lstm_2d(x, weight, bias, prev_state=None,
                          hidden_size=HIDDEN, kernel_size=K)
    jax.block_until_ready((h0, c0))
    h0_ref, c0_ref = _reference(x, weight, bias, None, HIDDEN, K)
    assert float(jnp.max(jnp.abs(h0 - h0_ref))) < 5e-2
    assert float(jnp.max(jnp.abs(c0 - c0_ref))) < 5e-2

    print("KERNEL_OK")
</pallas_src>

<mosaic_0001>
module attributes {stable_mosaic.version = 11 : i64} {
  func.func @_convlstm_kernel(%arg0: i32, %arg1: i32, %arg2: memref<1x324x128xbf16, #tpu.memory_space<vmem>>, %arg3: memref<128x324xbf16, #tpu.memory_space<vmem>>, %arg4: memref<128x1xf32, #tpu.memory_space<vmem>>, %arg5: memref<1x32x128xf32, #tpu.memory_space<vmem>>, %arg6: memref<1x32x128xf32, #tpu.memory_space<vmem>>, %arg7: memref<1x32x128xf32, #tpu.memory_space<vmem>>) attributes {dimension_semantics = [#tpu.dimension_semantics<parallel>, #tpu.dimension_semantics<parallel>], iteration_bounds = array<i64: 2, 2>, scalar_prefetch = 0 : i64, scratch_operands = 0 : i64, tpu.core_type = #tpu.core_type<tc>, window_params = [{transform_indices = @transform_0, window_bounds = array<i64: 1, 324, 128>}, {pipeline_mode = #tpu.pipeline_mode<synchronous>, transform_indices = @transform_1, window_bounds = array<i64: 128, 324>}, {pipeline_mode = #tpu.pipeline_mode<synchronous>, transform_indices = @transform_2, window_bounds = array<i64: 128, 1>}, {transform_indices = @transform_3, window_bounds = array<i64: 1, 32, 128>}, {transform_indices = @transform_4, window_bounds = array<i64: 1, 32, 128>}, {transform_indices = @transform_5, window_bounds = array<i64: 1, 32, 128>}]} {
    %c0 = arith.constant 0 : index
    %c0_0 = arith.constant 0 : index
    %0 = vector.load %arg3[%c0, %c0_0] : memref<128x324xbf16, #tpu.memory_space<vmem>>, vector<128x324xbf16>
    %c0_1 = arith.constant 0 : index
    %c0_2 = arith.constant 0 : index
    %c0_3 = arith.constant 0 : index
    %1 = vector.load %arg2[%c0_1, %c0_2, %c0_3] : memref<1x324x128xbf16, #tpu.memory_space<vmem>>, vector<1x324x128xbf16>
    %2 = vector.shape_cast %1 : vector<1x324x128xbf16> to vector<324x128xbf16>
    %cst = arith.constant dense<0.000000e+00> : vector<128x128xf32>
    %3 = tpu.matmul %0, %2, %cst {dimension_numbers = #tpu.dot_dimension_numbers<[1], [0], [0], [1], [0, 0, 1, 1], [], []>} : vector<128x324xbf16>, vector<324x128xbf16>, vector<128x128xf32> -> vector<128x128xf32>
    %c0_4 = arith.constant 0 : index
    %c0_5 = arith.constant 0 : index
    %4 = vector.load %arg4[%c0_4, %c0_5] : memref<128x1xf32, #tpu.memory_space<vmem>>, vector<128x1xf32>
    %5 = vector.broadcast %4 : vector<128x1xf32> to vector<128x128xf32>
    %6 = arith.addf %3, %5 : vector<128x128xf32>
    %7 = vector.extract_strided_slice %6 {offsets = [0, 0], sizes = [32, 128], strides = [1, 1]} : vector<128x128xf32> to vector<32x128xf32>
    %8 = arith.negf %7 : vector<32x128xf32>
    %9 = math.exp %8 : vector<32x128xf32>
    %cst_6 = arith.constant 1.000000e+00 : f32
    %10 = vector.broadcast %cst_6 : f32 to vector<32x128xf32>
    %11 = arith.addf %10, %9 : vector<32x128xf32>
    %12 = arith.divf %10, %11 : vector<32x128xf32>
    %13 = vector.extract_strided_slice %6 {offsets = [32, 0], sizes = [32, 128], strides = [1, 1]} : vector<128x128xf32> to vector<32x128xf32>
    %14 = arith.negf %13 : vector<32x128xf32>
    %15 = math.exp %14 : vector<32x128xf32>
    %cst_7 = arith.constant 1.000000e+00 : f32
    %16 = vector.broadcast %cst_7 : f32 to vector<32x128xf32>
    %17 = arith.addf %16, %15 : vector<32x128xf32>
    %18 = arith.divf %16, %17 : vector<32x128xf32>
    %19 = vector.extract_strided_slice %6 {offsets = [64, 0], sizes = [32, 128], strides = [1, 1]} : vector<128x128xf32> to vector<32x128xf32>
    %20 = arith.negf %19 : vector<32x128xf32>
    %21 = math.exp %20 : vector<32x128xf32>
    %cst_8 = arith.constant 1.000000e+00 : f32
    %22 = vector.broadcast %cst_8 : f32 to vector<32x128xf32>
    %23 = arith.addf %22, %21 : vector<32x128xf32>
    %24 = arith.divf %22, %23 : vector<32x128xf32>
    %25 = vector.extract_strided_slice %6 {offsets = [96, 0], sizes = [32, 128], strides = [1, 1]} : vector<128x128xf32> to vector<32x128xf32>
    %26 = math.tanh %25 : vector<32x128xf32>
    %c0_9 = arith.constant 0 : index
    %c0_10 = arith.constant 0 : index
    %c0_11 = arith.constant 0 : index
    %27 = vector.load %arg5[%c0_9, %c0_10, %c0_11] : memref<1x32x128xf32, #tpu.memory_space<vmem>>, vector<1x32x128xf32>
    %28 = vector.shape_cast %27 : vector<1x32x128xf32> to vector<32x128xf32>
    %29 = arith.mulf %18, %28 : vector<32x128xf32>
    %30 = arith.mulf %12, %26 : vector<32x128xf32>
    %31 = arith.addf %29, %30 : vector<32x128xf32>
    %32 = math.tanh %31 : vector<32x128xf32>
    %33 = arith.mulf %24, %32 : vector<32x128xf32>
    %c0_12 = arith.constant 0 : index
    %c0_13 = arith.constant 0 : index
    %c0_14 = arith.constant 0 : index
    %34 = vector.load %arg7[%c0_12, %c0_13, %c0_14] : memref<1x32x128xf32, #tpu.memory_space<vmem>>, vector<1x32x128xf32>
    %35 = vector.shape_cast %34 : vector<1x32x128xf32> to vector<32x128xf32>
    %36 = vector.shape_cast %31 : vector<32x128xf32> to vector<1x32x128xf32>
    tpu.vector_store %arg7[%c0_12, %c0_13, %c0_14], %36 {strides = array<i32>} : memref<1x32x128xf32, #tpu.memory_space<vmem>>, vector<1x32x128xf32>,
    %c0_15 = arith.constant 0 : index
    %c0_16 = arith.constant 0 : index
    %c0_17 = arith.constant 0 : index
    %37 = vector.load %arg6[%c0_15, %c0_16, %c0_17] : memref<1x32x128xf32, #tpu.memory_space<vmem>>, vector<1x32x128xf32>
    %38 = vector.shape_cast %37 : vector<1x32x128xf32> to vector<32x128xf32>
    %39 = vector.shape_cast %33 : vector<32x128xf32> to vector<1x32x128xf32>
    tpu.vector_store %arg6[%c0_15, %c0_16, %c0_17], %39 {strides = array<i32>} : memref<1x32x128xf32, #tpu.memory_space<vmem>>, vector<1x32x128xf32>,
    return
  }
  func.func @transform_0(%arg0: i32, %arg1: i32) -> (i32, i32, i32) {
    %c0_i32 = arith.constant 0 : i32
    %c0_i32_0 = arith.constant 0 : i32
    return %arg0, %c0_i32, %arg1 : i32, i32, i32
  }
  func.func @transform_1(%arg0: i32, %arg1: i32) -> (i32, i32) {
    %c0_i32 = arith.constant 0 : i32
    %c0_i32_0 = arith.constant 0 : i32
    %c0_i32_1 = arith.constant 0 : i32
    return %c0_i32, %c0_i32_0 : i32, i32
  }
  func.func @transform_2(%arg0: i32, %arg1: i32) -> (i32, i32) {
    %c0_i32 = arith.constant 0 : i32
    %c0_i32_0 = arith.constant 0 : i32
    %c0_i32_1 = arith.constant 0 : i32
    return %c0_i32, %c0_i32_0 : i32, i32
  }
  func.func @transform_3(%arg0: i32, %arg1: i32) -> (i32, i32, i32) {
    %c0_i32 = arith.constant 0 : i32
    %c0_i32_0 = arith.constant 0 : i32
    return %arg0, %c0_i32, %arg1 : i32, i32, i32
  }
  func.func @transform_4(%arg0: i32, %arg1: i32) -> (i32, i32, i32) {
    %c0_i32 = arith.constant 0 : i32
    %c0_i32_0 = arith.constant 0 : i32
    return %arg0, %c0_i32, %arg1 : i32, i32, i32
  }
  func.func @transform_5(%arg0: i32, %arg1: i32) -> (i32, i32, i32) {
    %c0_i32 = arith.constant 0 : i32
    %c0_i32_0 = arith.constant 0 : i32
    return %arg0, %c0_i32, %arg1 : i32, i32, i32
  }
}

</mosaic_0001>

<bundles_post_ra>
// kernel: tpu_custom_call.1
= control target key start
LH: loop header
LB: loop body
LE: loop exit
PB: predicated region body
PF: predicated region fallthrough
CT: control target
= control target key end

     0   :  { %11 = vsyncpa [#allocation5], 0  ;;  %s2474_s0 = inlined_call_operand.vmem [shape: bf16[2,324,256], index: 0, kind: input, shape index: {}]   ;;  %s2475_s1 = inlined_call_operand.vmem [shape: bf16[128,324], index: 1, kind: input, shape index: {}]   ;;  %s2476_s2 = inlined_call_operand.vmem [shape: f32[128,1], index: 2, kind: input, shape index: {}]   ;;  %s2477_s3 = inlined_call_operand.vmem [shape: f32[2,32,256], index: 3, kind: input, shape index: {}]   ;;  %s2478_s4 = inlined_call_operand.hbm [shape: f32[2,32,256], index: 4, kind: output, shape index: {0}]   ;;  %s2479_s5 = inlined_call_operand.hbm [shape: f32[2,32,256], index: 5, kind: output, shape index: {1}]  }
   0x1   :  { %13 = vsyncpa [#allocation5 + $0x1], 0 }
   0x2   :  { %14 = vsyncpa [#allocation7], 0 }
   0x3   :  { %16 = vsyncpa [#allocation7 + $0x1], 0  ;;  %s1998_s18 = smov 0   ;;  %s2000_s19 = smov 0  }
   0x4   :  { %s2002_s20 = smov 0   ;;  %s2004_s21 = smov 0  }
   0x5   :  { %s2006_s22 = smov 0   ;;  %s2008_s23 = smov 0  }
   0x6   :  { %s2010_s24 = smov 0   ;;  %s2012_s25 = smov 0  }
   0x7 LB: > { %s1443_s26 = sadd.s32 4294967295, %s1960_s25   ;;  %s1444_s27 = sadd.s32 4294967294, %s1960_s25   ;;  %s1960_s25 = sphi %s2012_s25, %s22_s25   ;;  %s1956_s24 = sphi %s2010_s24, %s2493_s24   ;;  %s1952_s23 = sphi %s2008_s23, %s2492_s23   ;;  %s1948_s22 = sphi %s2006_s22, %s2491_s22   ;;  %s1944_s21 = sphi %s2004_s21, %s2490_s21   ;;  %s1940_s20 = sphi %s2002_s20, %s2489_s20   ;;  %s1936_s19 = sphi %s2000_s19, %s2488_s19   ;;  %s1932_s18 = sphi %s1998_s18, %s2487_s18  }
   0x8   : > { %s31_s28 = sadd.s32 1, %s1952_s23  ;;  %s34_s29 = sadd.s32 1, %s1956_s24 }
   0x9   : > { %p32_p0 = scmp.ge.s32.totalorder %s31_s28, 2  ;;  %p50_p1 = scmp.ne.s32.totalorder %s1940_s20, %s1936_s19 }
   0xa   : > { %p51_p2 = scmp.eq.s32.totalorder %s1960_s25, 0  ;;  %p152_p5 = scmp.eq.s32.totalorder %s1443_s26, 3 }
   0xb   : > { %s2495_s28 = smov (%p32_p0, %s31_s28), 0  ;;  %s2497_s29 = smov (!%p32_p0, %s34_s29), %s1956_s24 }
   0xc   : > { %s39_s30 = ssub.s32 %s1952_s23, %s2495_s28  ;;  %p2050_p3 = por %p51_p2, %p50_p1 }
   0xd   : > { %p36_p4 = scmp.ge.s32.totalorder %s2497_s29, 2  ;;  %p157_p6 = scmp.ne.s32.totalorder %s1936_s19, %s1932_s18 }
   0xe   : > { %p158_p7 = scmp.eq.s32.totalorder %s1444_s27, 3  ;;  %p2058_p8 = por %p152_p5, %p50_p1 }
   0xf   : > { %s2499_s29 = smov (%p36_p4, %s2497_s29), 0  ;;  %s43_s11 = sadd.s32 1, %s1940_s20 }
  0x10   : > { %p2062_p9 = por %p158_p7, %p157_p6  ;;  %s38_s9 = ssub.s32 %s1956_s24, %s2499_s29 }
  0x11   : > { %s40_s10 = sor.u32 %s39_s30, %s38_s9  ;;  %p1446_p11 = scmp.ge.s32.totalorder %s1960_s25, 4 }
  0x12   : > { %p41_p10 = scmp.eq.s32.totalorder %s40_s10, 0 }
  0x13   : > { %208 = sbr.rel (%p1446_p11) target bundleno = 68 (0x44), region = 24 }
  0x14   : > { %s2070_s12 = scalar_select %p41_p10, %s1940_s20, %s43_s11  }
  0x1a   : > { %211 = sbr.rel (!%p2050_p3) target bundleno = 60 (0x3c), region = 28  ;;  %s213_s13 = sand.u32 (%p2050_p3), 1, %s1940_s20  }
  0x1b   : > { %s1633_s14 = smul.u32 (%p2050_p3), 82, %s1956_s24 }
  0x1c   : > { %s1632_s15 = smul.u32 (%p2050_p3), 164, %s213_s13 }
  0x1d   : > { %s217_s16 = sadd.s32 (%p2050_p3), %s1952_s23, %s1633_s14 }
  0x1e   : > { %s1447_s17 = sshll.u32 (%p2050_p3), %s217_s16, 2  ;;  %s2086_s9 = scalar_lea.vmem (%p2050_p3), [#allocation2], %s1632_s15 }
  0x1f   : > { %s2081_s30 = scalar_lea.vmem (%p2050_p3), %s2474_s0, %s1447_s17 }
  0x20   : > { %v235_v0 = vld [vmem:[%s2081_s30] sm:$0xf] (%p2050_p3)  ;;  %v237_v1 = vld [vmem:[%s2081_s30 + $0x8] sm:$0xf] (%p2050_p3)  ;;  %v239_v2 = vld [vmem:[%s2081_s30 + $0x10] sm:$0xf] (%p2050_p3) }
  0x21   : > { %236 = vst [vmem:[%s2086_s9] sm:$0xf] %v235_v0  ;;  %238 = vst [vmem:[%s2086_s9 + $0x4] sm:$0xf] %v237_v1  ;;  %v241_v3 = vld [vmem:[%s2081_s30 + $0x18] sm:$0xf] }
  0x22   : > { %240 = vst [vmem:[%s2086_s9 + $0x8] sm:$0xf] %v239_v2  ;;  %v243_v4 = vld [vmem:[%s2081_s30 + $0x20] sm:$0xf]  ;;  %v245_v5 = vld [vmem:[%s2081_s30 + $0x28] sm:$0xf] }
  0x23   : > { %242 = vst [vmem:[%s2086_s9 + $0xc] sm:$0xf] %v241_v3  ;;  %244 = vst [vmem:[%s2086_s9 + $0x10] sm:$0xf] %v243_v4  ;;  %v247_v6 = vld [vmem:[%s2081_s30 + $0x30] sm:$0xf] }
  0x24   : > { %246 = vst [vmem:[%s2086_s9 + $0x14] sm:$0xf] %v245_v5  ;;  %v249_v7 = vld [vmem:[%s2081_s30 + $0x38] sm:$0xf]  ;;  %v251_v8 = vld [vmem:[%s2081_s30 + $0x40] sm:$0xf] }
  0x25   : > { %248 = vst [vmem:[%s2086_s9 + $0x18] sm:$0xf] %v247_v6  ;;  %250 = vst [vmem:[%s2086_s9 + $0x1c] sm:$0xf] %v249_v7  ;;  %v253_v9 = vld [vmem:[%s2081_s30 + $0x48] sm:$0xf] }
  0x26   : > { %252 = vst [vmem:[%s2086_s9 + $0x20] sm:$0xf] %v251_v8  ;;  %v255_v10 = vld [vmem:[%s2081_s30 + $0x50] sm:$0xf]  ;;  %v257_v11 = vld [vmem:[%s2081_s30 + $0x58] sm:$0xf] }
  0x27   : > { %254 = vst [vmem:[%s2086_s9 + $0x24] sm:$0xf] %v253_v9  ;;  %256 = vst [vmem:[%s2086_s9 + $0x28] sm:$0xf] %v255_v10  ;;  %v259_v12 = vld [vmem:[%s2081_s30 + $0x60] sm:$0xf] }
  0x28   : > { %258 = vst [vmem:[%s2086_s9 + $0x2c] sm:$0xf] %v257_v11  ;;  %v261_v13 = vld [vmem:[%s2081_s30 + $0x68] sm:$0xf]  ;;  %v263_v14 = vld [vmem:[%s2081_s30 + $0x70] sm:$0xf] }
  0x29   : > { %260 = vst [vmem:[%s2086_s9 + $0x30] sm:$0xf] %v259_v12  ;;  %262 = vst [vmem:[%s2086_s9 + $0x34] sm:$0xf] %v261_v13  ;;  %v265_v15 = vld [vmem:[%s2081_s30 + $0x78] sm:$0xf] }
  0x2a   : > { %264 = vst [vmem:[%s2086_s9 + $0x38] sm:$0xf] %v263_v14  ;;  %v267_v16 = vld [vmem:[%s2081_s30 + $0x80] sm:$0xf]  ;;  %v269_v17 = vld [vmem:[%s2081_s30 + $0x88] sm:$0xf] }
  0x2b   : > { %266 = vst [vmem:[%s2086_s9 + $0x3c] sm:$0xf] %v265_v15  ;;  %268 = vst [vmem:[%s2086_s9 + $0x40] sm:$0xf] %v267_v16  ;;  %v271_v18 = vld [vmem:[%s2081_s30 + $0x90] sm:$0xf] }
  0x2c   : > { %270 = vst [vmem:[%s2086_s9 + $0x44] sm:$0xf] %v269_v17  ;;  %v273_v19 = vld [vmem:[%s2081_s30 + $0x98] sm:$0xf]  ;;  %v275_v20 = vld [vmem:[%s2081_s30 + $0xa0] sm:$0xf] }
  0x2d   : > { %272 = vst [vmem:[%s2086_s9 + $0x48] sm:$0xf] %v271_v18  ;;  %274 = vst [vmem:[%s2086_s9 + $0x4c] sm:$0xf] %v273_v19  ;;  %v277_v21 = vld [vmem:[%s2081_s30 + $0xa8] sm:$0xf] }
  0x2e   : > { %276 = vst [vmem:[%s2086_s9 + $0x50] sm:$0xf] %v275_v20  ;;  %v279_v22 = vld [vmem:[%s2081_s30 + $0xb0] sm:$0xf]  ;;  %v281_v23 = vld [vmem:[%s2081_s30 + $0xb8] sm:$0xf] }
  0x2f   : > { %278 = vst [vmem:[%s2086_s9 + $0x54] sm:$0xf] %v277_v21  ;;  %280 = vst [vmem:[%s2086_s9 + $0x58] sm:$0xf] %v279_v22  ;;  %v283_v24 = vld [vmem:[%s2081_s30 + $0xc0] sm:$0xf] }
  0x30   : > { %282 = vst [vmem:[%s2086_s9 + $0x5c] sm:$0xf] %v281_v23  ;;  %v285_v25 = vld [vmem:[%s2081_s30 + $0xc8] sm:$0xf]  ;;  %v287_v26 = vld [vmem:[%s2081_s30 + $0xd0] sm:$0xf] }
  0x31   : > { %284 = vst [vmem:[%s2086_s9 + $0x60] sm:$0xf] %v283_v24  ;;  %286 = vst [vmem:[%s2086_s9 + $0x64] sm:$0xf] %v285_v25  ;;  %v289_v27 = vld [vmem:[%s2081_s30 + $0xd8] sm:$0xf] }
  0x32   : > { %288 = vst [vmem:[%s2086_s9 + $0x68] sm:$0xf] %v287_v26  ;;  %v291_v28 = vld [vmem:[%s2081_s30 + $0xe0] sm:$0xf]  ;;  %v293_v29 = vld [vmem:[%s2081_s30 + $0xe8] sm:$0xf] }
  0x33   : > { %290 = vst [vmem:[%s2086_s9 + $0x6c] sm:$0xf] %v289_v27  ;;  %292 = vst [vmem:[%s2086_s9 + $0x70] sm:$0xf] %v291_v28  ;;  %v295_v30 = vld [vmem:[%s2081_s30 + $0xf0] sm:$0xf] }
  0x34   : > { %294 = vst [vmem:[%s2086_s9 + $0x74] sm:$0xf] %v293_v29  ;;  %v297_v31 = vld [vmem:[%s2081_s30 + $0xf8] sm:$0xf]  ;;  %v299_v32 = vld [vmem:[%s2081_s30 + $0x100] sm:$0xf] }
  0x35   : > { %296 = vst [vmem:[%s2086_s9 + $0x78] sm:$0xf] %v295_v30  ;;  %298 = vst [vmem:[%s2086_s9 + $0x7c] sm:$0xf] %v297_v31  ;;  %v301_v33 = vld [vmem:[%s2081_s30 + $0x108] sm:$0xf] }
  0x36   : > { %300 = vst [vmem:[%s2086_s9 + $0x80] sm:$0xf] %v299_v32  ;;  %v303_v34 = vld [vmem:[%s2081_s30 + $0x110] sm:$0xf]  ;;  %v305_v35 = vld [vmem:[%s2081_s30 + $0x118] sm:$0xf] }
  0x37   : > { %302 = vst [vmem:[%s2086_s9 + $0x84] sm:$0xf] %v301_v33  ;;  %304 = vst [vmem:[%s2086_s9 + $0x88] sm:$0xf] %v303_v34  ;;  %v307_v36 = vld [vmem:[%s2081_s30 + $0x120] sm:$0xf] }
  0x38   : > { %306 = vst [vmem:[%s2086_s9 + $0x8c] sm:$0xf] %v305_v35  ;;  %v309_v37 = vld [vmem:[%s2081_s30 + $0x128] sm:$0xf]  ;;  %v311_v38 = vld [vmem:[%s2081_s30 + $0x130] sm:$0xf] }
  0x39   : > { %308 = vst [vmem:[%s2086_s9 + $0x90] sm:$0xf] %v307_v36  ;;  %310 = vst [vmem:[%s2086_s9 + $0x94] sm:$0xf] %v309_v37  ;;  %v313_v39 = vld [vmem:[%s2081_s30 + $0x138] sm:$0xf] }
  0x3a   : > { %312 = vst [vmem:[%s2086_s9 + $0x98] sm:$0xf] %v311_v38  ;;  %v315_v40 = vld [vmem:[%s2081_s30 + $0x140] sm:$0xf]  ;;  %314 = vst [vmem:[%s2086_s9 + $0x9c] sm:$0xf] %v313_v39 }
  0x3b   : > { %316 = vst [vmem:[%s2086_s9 + $0xa0] sm:$0xf] %v315_v40 }
  0x3c PF: > { %421 = sbr.rel (!%p2050_p3) target bundleno = 68 (0x44), region = 69  ;;  %s423_s10 = sand.u32 (%p2050_p3), 1, %s1940_s20  }
  0x3d   : > { %s1449_s11 = sshll.u32 (%p2050_p3), %s1956_s24, 3  ;;  %s1448_s13 = sshll.u32 (%p2050_p3), %s423_s10, 5 }
  0x3e   : > { %s427_s14 = sadd.s32 (%p2050_p3), %s1952_s23, %s1449_s11  ;;  %s425_s27 = scalar_lea.vmem (%p2050_p3), [#allocation3], %s1448_s13 }
  0x3f   : > { %s1450_s15 = sshll.u32 (%p2050_p3), %s427_s14, 3 }
  0x40   : > { %s429_s26 = scalar_lea.vmem (%p2050_p3), %s2477_s3, %s1450_s15 }
  0x41   : > { %v463_v41 = vld [vmem:[%s429_s26] sm:$0xff] (%p2050_p3)  ;;  %v465_v42 = vld [vmem:[%s429_s26 + $0x10] sm:$0xff] (%p2050_p3) }
  0x42   : > { %v467_v43 = vld [vmem:[%s429_s26 + $0x20] sm:$0xff] (%p2050_p3)  ;;  %464 = vst [vmem:[%s425_s27] sm:$0xff] (%p2050_p3), %v463_v41  ;;  %466 = vst [vmem:[%s425_s27 + $0x8] sm:$0xff] (%p2050_p3), %v465_v42  ;;  %v469_v44 = vld [vmem:[%s429_s26 + $0x30] sm:$0xff] (%p2050_p3) }
  0x43   : > { %468 = vst [vmem:[%s425_s27 + $0x10] sm:$0xff] %v467_v43  ;;  %470 = vst [vmem:[%s425_s27 + $0x18] sm:$0xff] %v469_v44 }
  0x44 PF: > { %p1451_p12 = scmp.ge.s32.totalorder %s1960_s25, 1  ;;  %p475_p13 = scmp.lt.s32.totalorder %s1960_s25, 5 }
  0x46   : > { %p476_p0 = pnand %p1451_p12, %p475_p13 }
  0x47   : > { %s2178_s6 = sand.u32 (!%p476_p0), 1, %s1936_s19   ;;  %v1739_v45 = vld [vmem:[%s2475_s1 + $0x4] ss:$12 sps:$4 sm:$0xff] (!%p476_p0)   ;;  %vm938_vm0 = vcmask (!%p476_p0), 556032   ;;  %v1741_v46 = vld [vmem:[%s2475_s1 + $0x8] ss:$12 sps:$4 sm:$0xff] (!%p476_p0)  }
  0x48   : > { %479 = sbr.rel (%p476_p0) target bundleno = 443 (0x1bb), region = 107  ;;  %999 = vmatprep.mubr.bf16.mxu0 (!%p476_p0), %v1739_v45  ;;  %1615 = vmatprep.mubr.msk.bf16.mxu1 (!%p476_p0), %vm938_vm0, %v1741_v46  ;;  %v1962_v49 = vmov (!%p476_p0), 0   ;;  %vm963_vm1 = vcmask (!%p476_p0), 1041408   ;;  %v1742_v6 = vld [vmem:[%s2475_s1 + $0x20] ss:$12 sps:$4 sm:$0xff] (!%p476_p0)   ;;  %v601_v13 = vld [vmem:[%s2476_s2 + $0x10] sm:$0xff] (!%p476_p0) }
  0x49   : > { %s1634_s30 = smul.u32 (!%p476_p0), 164, %s2178_s6  ;;  %1715 = vset.pattern.permute.xlu0 (!%p476_p0), %v1962_v49  ;;  %1716 = vset.pattern.permute.xlu1 (!%p476_p0), %v1962_v49  ;;  %v1749_v7 = vld [vmem:[%s2475_s1 + $0x38] ss:$12 sps:$4 sm:$0xff] (!%p476_p0)   ;;  %v1737_v8 = vld [vmem:[%s2475_s1] ss:$12 sps:$4 sm:$0xff] (!%p476_p0)   ;;  %v605_v22 = vld [vmem:[%s2476_s2 + $0x30] sm:$0xff] (!%p476_p0) }
  0x4a   : > { %v1743_v9 = vld [vmem:[%s2475_s1 + $0x1c] ss:$12 sps:$4 sm:$0xff] (!%p476_p0)   ;;  %v599_v11 = vld [vmem:[%s2476_s2] sm:$0xff] (!%p476_p0)  ;;  %627 = vperm.xlu1 (!%p476_p0), %1716, %v601_v13   ;;  %v1751_v25 = vld [vmem:[%s2475_s1 + $0x4c] ss:$12 sps:$4 sm:$0xff] (!%p476_p0)   ;;  %s1522_s16 = sshll.u32 (!%p476_p0), %s1948_s22, 3 }
  0x4b   : > { %s2187_s14 = scalar_lea.vmem (!%p476_p0), [#allocation2], %s1634_s30  ;;  %v1750_v10 = vld [vmem:[%s2475_s1 + $0x50] ss:$12 sps:$4 sm:$0xff] (!%p476_p0)   ;;  %v1757_v12 = vld [vmem:[%s2475_s1 + $0x68] ss:$12 sps:$4 sm:$0xff] (!%p476_p0)   ;;  %617 = vperm.xlu0 (!%p476_p0), %1715, %v599_v11   ;;  %v603_v18 = vld [vmem:[%s2476_s2 + $0x20] sm:$0xff] (!%p476_p0)  ;;  %s2366_s26 = sadd.s32 (!%p476_p0), %s1944_s21, %s1522_s16 }
  0x4c   : > { %v1717_v47 = vld [vmem:[%s2187_s14 + $0x40] sm:$0xff] (!%p476_p0)   ;;  %v1719_v50 = vld [vmem:[%s2187_s14 + $0x48] sm:$0xff] (!%p476_p0)   ;;  %v1721_v52 = vld [vmem:[%s2187_s14 + $0x50] sm:$0xff] (!%p476_p0)   ;;  %s2480_s22 = sshll.u32 (!%p476_p0), %s2366_s26, 7  ;;  %s1275_s10 = scalar_lea.sflag (!%p476_p0), [#allocation7], %s2178_s6 }
  0x4d   : > { %v1718_v48 = vld [vmem:[%s2187_s14] sm:$0xff] (!%p476_p0)   ;;  %1528 = vmatprep.subr.bf16.mxu0 (!%p476_p0), %v1717_v47  ;;  %v1720_v51 = vld [vmem:[%s2187_s14 + $0x8] sm:$0xff] (!%p476_p0)   ;;  %v1722_v53 = vld [vmem:[%s2187_s14 + $0x10] sm:$0xff] (!%p476_p0)   ;;  %s2377_s9 = scalar_lea.hbm (!%p476_p0), %s2479_s5, %s2480_s22  ;;  %s1963_s13 = smov (!%p476_p0), [#allocation6]  }
  0x4e   : > { %1529 = vmatpush3.bf16.msra.mxu0 (!%p476_p0), %v1718_v48  ;;  %v1723_v54 = vld [vmem:[%s2187_s14 + $0x58] sm:$0xff] (!%p476_p0)   ;;  %v1726_v55 = vld [vmem:[%s2187_s14 + $0x80] sm:$0xff] (!%p476_p0)   ;;  %v1729_v58 = vld [vmem:[%s2187_s14 + $0x88] sm:$0xff] (!%p476_p0)  }
  0x4f   : > { %1530 = vmatprep.subr.bf16.mxu0 %v1719_v50  ;;  %v1724_v56 = vld [vmem:[%s2187_s14 + $0x18] sm:$0xff]   ;;  %v1725_v57 = vld [vmem:[%s2187_s14 + $0x60] sm:$0xff]   ;;  %1605 = vmatprep.subr.bf16.mxu1 %v1726_v55  ;;  %v1732_v60 = vld [vmem:[%s2187_s14 + $0x90] sm:$0xff]  }
  0x50   : > { %1606 = vmatpush3.bf16.msra.mxu1 %v1726_v55  ;;  %v1727_v59 = vld [vmem:[%s2187_s14 + $0x20] sm:$0xff]   ;;  %v1728_v61 = vld [vmem:[%s2187_s14 + $0x68] sm:$0xff]   ;;  %v1735_v62 = vld [vmem:[%s2187_s14 + $0x98] sm:$0xff]  }
  0x51   : > { %1607 = vmatprep.subr.bf16.mxu1 %v1729_v58  ;;  %v1730_v63 = vld [vmem:[%s2187_s14 + $0x28] sm:$0xff]   ;;  %v1731_v0 = vld [vmem:[%s2187_s14 + $0x70] sm:$0xff]   ;;  %v1740_v1 = vld [vmem:[%s2187_s14 + $0xa0] ss:$0 sps:$4 sm:$0x33]  }
  0x52   : > { %1531 = vmatpush3.bf16.msra.mxu0 %v1720_v51  ;;  %v1733_v2 = vld [vmem:[%s2187_s14 + $0x30] sm:$0xff]   ;;  %v1734_v3 = vld [vmem:[%s2187_s14 + $0x78] sm:$0xff]   ;;  %v965_v4 = vsel %vm963_vm1, %v1740_v1, 0  ;;  %v600_v14 = vld [vmem:[%s2476_s2 + $0x8] sm:$0xff] }
  0x53   : > { %1532 = vmatprep.subr.bf16.mxu0 %v1721_v52  ;;  %v1736_v5 = vld [vmem:[%s2187_s14 + $0x38] sm:$0xff]   ;;  %622 = vperm.xlu0 %1715, %v600_v14   ;;  %v604_v19 = vld [vmem:[%s2476_s2 + $0x28] sm:$0xff]  ;;  %v609_v29 = vld [vmem:[%s2476_s2 + $0x50] sm:$0xff]  ;;  %s2349_s14 = sshll.u32 %s2178_s6, 5 }
  0x54   : > { %1608 = vmatpush3.bf16.msra.mxu1 %v1729_v58  ;;  %v1745_v15 = vld [vmem:[%s2475_s1 + $0x18] ss:$12 sps:$4 sm:$0xff]   ;;  %v1746_v17 = vld [vmem:[%s2475_s1 + $0x34] ss:$12 sps:$4 sm:$0xff]   ;;  %v1748_v23 = vld [vmem:[%s2475_s1 + $0x30] ss:$12 sps:$4 sm:$0xff]  }
  0x55   : > { %1609 = vmatprep.subr.bf16.mxu1 %v1732_v60  ;;  %v602_v16 = vld [vmem:[%s2476_s2 + $0x18] sm:$0xff]  ;;  %v1758_v20 = vld [vmem:[%s2475_s1 + $0x80] ss:$12 sps:$4 sm:$0xff]   ;;  %v1753_v30 = vld [vmem:[%s2475_s1 + $0x48] ss:$12 sps:$4 sm:$0xff]   ;;  %s2353_s15 = scalar_lea.vmem [#allocation3], %s2349_s14 }
  0x56   : > { %1533 = vmatpush3.bf16.msra.mxu0 %v1722_v53  ;;  %632 = vperm.xlu1 %1716, %v602_v16   ;;  %v1765_v21 = vld [vmem:[%s2475_s1 + $0x98] ss:$12 sps:$4 sm:$0xff]   ;;  %v608_v27 = vld [vmem:[%s2476_s2 + $0x48] sm:$0xff]  ;;  %v1766_v28 = vld [vmem:[%s2475_s1 + $0xb0] ss:$12 sps:$4 sm:$0xff]   ;;  %s2360_s17 = scalar_lea.vmem [#allocation6], %s2349_s14 }
  0x57   : > { %1534 = vmatprep.subr.bf16.mxu0 %v1723_v54  ;;  %637 = vperm.xlu0 %1715, %v603_v18   ;;  %v606_v24 = vld [vmem:[%s2476_s2 + $0x38] sm:$0xff]  ;;  %v607_v26 = vld [vmem:[%s2476_s2 + $0x40] sm:$0xff]  ;;  %v612_v34 = vld [vmem:[%s2476_s2 + $0x68] sm:$0xff]  ;;  %s1306_s27 = sshll.u32 %s2360_s17, 4  ;;  %s2379_s27 = int_to_ptr.vmem [resolvable:$true] %s1306_s27 }
  0x58   : > { %1610 = vmatpush3.bf16.msra.mxu1 %v1732_v60  ;;  %v610_v31 = vld [vmem:[%s2476_s2 + $0x58] sm:$0xff]  ;;  %v1754_v32 = vld [vmem:[%s2475_s1 + $0x64] ss:$12 sps:$4 sm:$0xff]   ;;  %v1756_v36 = vld [vmem:[%s2475_s1 + $0x60] ss:$12 sps:$4 sm:$0xff]   ;;  %s1834_s11 = scalar_lea.vmem %s2379_s27, 512 }
  0x59   : > { %1611 = vmatprep.subr.bf16.mxu1 %v1735_v62  ;;  %v611_v33 = vld [vmem:[%s2476_s2 + $0x60] sm:$0xff]  ;;  %v613_v35 = vld [vmem:[%s2476_s2 + $0x70] sm:$0xff]  ;;  %v614_v37 = vld [vmem:[%s2476_s2 + $0x78] sm:$0xff]  ;;  %p1835_p1 = scmp.ne.s32.totalorder %s2379_s27, %s1834_s11 }
  0x5a   : > { %1535 = vmatpush3.bf16.msra.mxu0 %v1724_v56  ;;  %642 = vperm.xlu1 %1716, %v604_v19   ;;  %v1759_v38 = vld [vmem:[%s2475_s1 + $0x7c] ss:$12 sps:$4 sm:$0xff]   ;;  %v1761_v39 = vld [vmem:[%s2475_s1 + $0x78] ss:$12 sps:$4 sm:$0xff]   ;;  %v1762_v40 = vld [vmem:[%s2475_s1 + $0x94] ss:$12 sps:$4 sm:$0xff]  }
  0x5b   : > { %1536 = vmatprep.subr.bf16.mxu0 %v1725_v57  ;;  %647 = vperm.xlu0 %1715, %v605_v22   ;;  %v1764_v41 = vld [vmem:[%s2475_s1 + $0x90] ss:$12 sps:$4 sm:$0xff]   ;;  %v1767_v42 = vld [vmem:[%s2475_s1 + $0xac] ss:$12 sps:$4 sm:$0xff]   ;;  %v1769_v43 = vld [vmem:[%s2475_s1 + $0xa8] ss:$12 sps:$4 sm:$0xff]   ;;  %p1836_p2 = pnand %p1835_p1, %p2058_p8 }
  0x5c   : > { %1612 = vmatpush3.bf16.msra.mxu1 %v1735_v62 }
  0x5d   : > { %1631 = vmatprep.subr.msk.bf16.mxu1 %vm963_vm1, %v1740_v1  ;;  %p1837_p3 = pneg %p1836_p2 }
  0x5e   : > { %1537 = vmatpush3.bf16.msra.mxu0 %v1727_v59  ;;  %652 = vperm.xlu1 %1716, %v606_v24  }
  0x5f   : > { %1538 = vmatprep.subr.bf16.mxu0 %v1728_v61  ;;  %657 = vperm.xlu0 %1715, %v607_v26  }
  0x60   : > { %1614 = vmatpush3.bf16.msra.mxu1 %v965_v4 }
  0x62   : > { %1539 = vmatpush3.bf16.msra.mxu0 %v1730_v63  ;;  %662 = vperm.xlu1 %1716, %v608_v27  }
  0x63   : > { %1540 = vmatprep.subr.bf16.mxu0 %v1731_v0  ;;  %1616 = vmatmul.mubr.msk.bf16.vlgmr.msra.gmra.mrb[0].mxu1 %vm938_vm0, %v1742_v6 }
  0x64   : > { %1619 = vmatprep.mubr.msk.bf16.mxu1 %vm938_vm0, %v1749_v7  ;;  %667 = vperm.xlu0 %1715, %v609_v29  }
  0x66   : > { %1541 = vmatpush3.bf16.msra.mxu0 %v1733_v2  ;;  %672 = vperm.xlu1 %1716, %v610_v31  }
  0x67   : > { %1542 = vmatprep.subr.bf16.mxu0 %v1734_v3 }
  0x68   : > { %677 = vperm.xlu0 %1715, %v611_v33  }
  0x6a   : > { %1543 = vmatpush3.bf16.msra.mxu0 %v1736_v5  ;;  %682 = vperm.xlu1 %1716, %v612_v34  }
  0x6b   : > { %1620 = vmatmul.mubr.msk.bf16.gmra.mrb[4].mxu1 %vm938_vm0, %v1750_v10 }
  0x6c   : > { %1623 = vmatprep.mubr.msk.bf16.mxu1 %vm938_vm0, %v1757_v12  ;;  %687 = vperm.xlu0 %1715, %v613_v35  }
  0x6d   : > { %1000 = vmatmul.mubr.bf16.vlgmr.msra.gmra.mrb[0].mxu0 %v1737_v8 }
  0x6e   : > { %1007 = vmatprep.mubr.bf16.mxu0 %v1743_v9  ;;  %692 = vperm.xlu1 %1716, %v614_v37  }
  0x73   : > { %1624 = vmatmul.mubr.msk.bf16.gmra.mrb[8].mxu1 %vm938_vm0, %v1758_v20 }
  0x74   : > { %1627 = vmatprep.mubr.msk.bf16.mxu1 %vm938_vm0, %v1765_v21 }
  0x75   : > { %1008 = vmatmul.mubr.bf16.gmra.mrb[4].mxu0 %v1745_v15 }
  0x76   : > { %1015 = vmatprep.mubr.bf16.mxu0 %v1746_v17 }
  0x7b   : > { %1628 = vmatmul.mubr.msk.bf16.gmra.mrb[12].mxu1 %vm938_vm0, %v1766_v28 }
  0x7d   : > { %1016 = vmatmul.mubr.bf16.gmra.mrb[8].mxu0 %v1748_v23 }
  0x7e   : > { %1023 = vmatprep.mubr.bf16.mxu0 %v1751_v25 }
  0x85   : > { %1024 = vmatmul.mubr.bf16.gmra.mrb[12].mxu0 %v1753_v30 }
  0x86   : > { %1031 = vmatprep.mubr.bf16.mxu0 %v1754_v32 }
  0x8d   : > { %1032 = vmatmul.mubr.bf16.gmra.mrb[16].mxu0 %v1756_v36 }
  0x8e   : > { %1039 = vmatprep.mubr.bf16.mxu0 %v1759_v38 }
  0x95   : > { %1040 = vmatmul.mubr.bf16.gmra.mrb[20].mxu0 %v1761_v39 }
  0x96   : > { %1047 = vmatprep.mubr.bf16.mxu0 %v1762_v40 }
  0x9d   : > { %1048 = vmatmul.mubr.bf16.gmra.mrb[24].mxu0 %v1764_v41 }
  0x9e   : > { %1055 = vmatprep.mubr.bf16.mxu0 %v1767_v42 }
  0xa5   : > { %1056 = vmatmul.mubr.bf16.gmra.mrb[28].mxu0 %v1769_v43 }
  0xc9   : > { %v628_v61 = vpop.permute.xlu1 %627 }
  0xca   : > { %v618_v44 = vpop.permute.xlu0 %617 }
  0xd2   : > { %v623_v54 = vpop.permute.xlu0 %622 }
  0xd5   : > { %v633_v8 = vpop.permute.xlu1 %632 }
  0xd6   : > { %v638_v20 = vpop.permute.xlu0 %637 }
  0xd9   : > { %v643_v24 = vpop.permute.xlu1 %642 }
  0xda   : > { %v648_v36 = vpop.permute.xlu0 %647 }
  0xdd   : > { %v653_v40 = vpop.permute.xlu1 %652 }
 0x136   : > { %v1617_v45 = vpop.f32.mrb[0].mxu1 }
 0x137   : > { %v1098_v46 = vpop.f32.mrb[1].mxu1 }
 0x138   : > { %v1618_v47 = vpop.f32.mrb[2].mxu1 }
 0x139   : > { %v1101_v49 = vpop.f32.mrb[3].mxu1 }
 0x13e   : > { %v1621_v57 = vpop.f32.mrb[4].mxu1 }
 0x13f   : > { %v1114_v60 = vpop.f32.mrb[5].mxu1 }
 0x140   : > { %v1544_v48 = vpop.f32.mrb[0].mxu0  ;;  %v1622_v62 = vpop.f32.mrb[6].mxu1 }
 0x141   : > { %v1545_v50 = vpop.f32.mrb[1].mxu0  ;;  %v1117_v1 = vpop.f32.mrb[7].mxu1 }
 0x142   : > { %v1546_v51 = vadd.f32 %v1545_v50, %v1544_v48  ;;  %v1547_v52 = vpop.f32.mrb[2].mxu0 }
 0x143   : > { %v1548_v53 = vpop.f32.mrb[3].mxu0 }
 0x144   : > { %v1549_v55 = vadd.f32 %v1548_v53, %v1547_v52  ;;  %v1002_v56 = vadd.f32 %v1546_v51, %v618_v44  ;;  %v658_v51 = vpop.permute.xlu0 %657 }
 0x146   : > { %v1005_v58 = vadd.f32 %v1549_v55, %v623_v54  ;;  %v1099_v59 = vadd.f32 %v1098_v46, %v1002_v56  ;;  %v2332_v9 = vpop.f32.mrb[8].mxu1  ;;  %v663_v56 = vpop.permute.xlu1 %662 }
 0x147   : > { %v1130_v12 = vpop.f32.mrb[9].mxu1 }
 0x148   : > { %v1102_v63 = vadd.f32 %v1101_v49, %v1005_v58  ;;  %v1550_v0 = vpop.f32.mrb[4].mxu0  ;;  %v2334_v13 = vpop.f32.mrb[10].mxu1  ;;  %v1508_v41 = vmul.f32 -1.442695, %v1099_v59 }
 0x149   : > { %v1551_v2 = vpop.f32.mrb[5].mxu0  ;;  %v1133_v16 = vpop.f32.mrb[11].mxu1 }
 0x14a   : > { %v1552_v3 = vadd.f32 %v1551_v2, %v1550_v0  ;;  %v1553_v4 = vpop.f32.mrb[6].mxu0  ;;  %1770 = vpow2.f32 %v1508_v41  ;;  %v1509_v53 = vmul.f32 -1.442695, %v1102_v63 }
 0x14b   : > { %v1554_v5 = vpop.f32.mrb[7].mxu0 }
 0x14c   : > { %v1010_v6 = vadd.f32 %v1552_v3, %v628_v61  ;;  %v1555_v7 = vadd.f32 %v1554_v5, %v1553_v4  ;;  %v668_v4 = vpop.permute.xlu0 %667 }
 0x14e   : > { %v1107_v10 = vadd.f32 %v1617_v45, %v1010_v6  ;;  %v1013_v11 = vadd.f32 %v1555_v7, %v633_v8  ;;  %v2336_v25 = vpop.f32.mrb[12].mxu1 }
 0x14f   : > { %v2338_v28 = vpop.f32.mrb[13].mxu1 }
 0x150   : > { %v1110_v14 = vadd.f32 %v1618_v47, %v1013_v11  ;;  %v1556_v15 = vpop.f32.mrb[8].mxu0  ;;  %v2340_v29 = vpop.f32.mrb[14].mxu1  ;;  %v1510_v58 = vmul.f32 -1.442695, %v1107_v10 }
 0x151   : > { %v1557_v17 = vpop.f32.mrb[9].mxu0  ;;  %v2342_v32 = vpop.f32.mrb[15].mxu1 }
 0x152   : > { %v1558_v18 = vadd.f32 %v1557_v17, %v1556_v15  ;;  %v1559_v19 = vpop.f32.mrb[10].mxu0  ;;  %v1511_v6 = vmul.f32 -1.442695, %v1110_v14  ;;  %v673_v10 = vpop.permute.xlu1 %672 }
 0x153   : > { %v1560_v21 = vpop.f32.mrb[11].mxu0 }
 0x154   : > { %v1561_v22 = vadd.f32 %v1560_v21, %v1559_v19  ;;  %v1018_v23 = vadd.f32 %v1558_v18, %v638_v20  ;;  %v1771_v63 = vpop.eup %1770 }
 0x155   : > { %v1173_v17 = vadd.f32 1.0, %v1771_v63 }
 0x156   : > { %v1115_v26 = vadd.f32 %v1114_v60, %v1018_v23  ;;  %v1021_v27 = vadd.f32 %v1561_v22, %v643_v24 }
 0x158   : > { %v1118_v30 = vadd.f32 %v1117_v1, %v1021_v27  ;;  %v1562_v31 = vpop.f32.mrb[12].mxu0  ;;  %v1512_v44 = vmul.f32 -1.442695, %v1115_v26  ;;  %v678_v27 = vpop.permute.xlu0 %677 }
 0x159   : > { %v1563_v33 = vpop.f32.mrb[13].mxu0 }
 0x15a   : > { %v1564_v34 = vadd.f32 %v1563_v33, %v1562_v31  ;;  %v1565_v35 = vpop.f32.mrb[14].mxu0  ;;  %v1513_v47 = vmul.f32 -1.442695, %v1118_v30  ;;  %1772 = vpow2.f32 %v1512_v44 }
 0x15b   : > { %v1566_v37 = vpop.f32.mrb[15].mxu0 }
 0x15c   : > { %v1026_v38 = vadd.f32 %v1564_v34, %v648_v36  ;;  %v1567_v39 = vadd.f32 %v1566_v37, %v1565_v35  ;;  %1774 = vpow2.f32 %v1513_v47  ;;  %v683_v37 = vpop.permute.xlu1 %682 }
 0x15d   : > { %1776 = vpow2.f32 %v1509_v53 }
 0x15e   : > { %v1123_v42 = vadd.f32 %v1621_v57, %v1026_v38  ;;  %v1029_v43 = vadd.f32 %v1567_v39, %v653_v40  ;;  %1778 = vpow2.f32 %v1510_v58 }
 0x160   : > { %v1126_v45 = vadd.f32 %v1622_v62, %v1029_v43  ;;  %v1568_v46 = vpop.f32.mrb[16].mxu0  ;;  %v1514_v60 = vmul.f32 -1.442695, %v1123_v42 }
 0x161   : > { %v1569_v48 = vpop.f32.mrb[17].mxu0 }
 0x162   : > { %v1570_v49 = vadd.f32 %v1569_v48, %v1568_v46  ;;  %v1571_v50 = vpop.f32.mrb[18].mxu0  ;;  %v1515_v0 = vmul.f32 -1.442695, %v1126_v45  ;;  %1780 = vpow2.f32 %v1514_v60 }
 0x163   : > { %v1572_v52 = vpop.f32.mrb[19].mxu0 }
 0x164   : > { %v1573_v54 = vadd.f32 %v1572_v52, %v1571_v50  ;;  %v1034_v55 = vadd.f32 %v1570_v49, %v658_v51  ;;  %v1773_v11 = vpop.eup %1772  ;;  %1782 = vpow2.f32 %v1515_v0 }
 0x165   : > { %1784 = vpow2.f32 %v1511_v6  ;;  %v1197_v18 = vadd.f32 1.0, %v1773_v11 }
 0x166   : > { %v1131_v59 = vadd.f32 %v1130_v12, %v1034_v55  ;;  %v1037_v57 = vadd.f32 %v1573_v54, %v663_v56  ;;  %1786 = vrcp.f32 %v1173_v17  ;;  %v693_v55 = vpop.permute.xlu1 %692  ;;  %v1239_v17 = vld [vmem:[%s2353_s15 + $0x10] sm:$0xff] }
 0x167   : > { %1788 = vrcp.f32 %v1197_v18 }
 0x168   : > { %v1134_v61 = vadd.f32 %v1133_v16, %v1037_v57  ;;  %v1574_v62 = vpop.f32.mrb[20].mxu0  ;;  %v1775_v16 = vpop.eup %1774  ;;  %v1516_v21 = vmul.f32 -1.442695, %v1131_v59 }
 0x169   : > { %v1575_v1 = vpop.f32.mrb[21].mxu0  ;;  %v1777_v23 = vpop.eup %1776  ;;  %v1198_v24 = vadd.f32 1.0, %v1775_v16 }
 0x16a   : > { %v1576_v2 = vadd.f32 %v1575_v1, %v1574_v62  ;;  %v1577_v3 = vpop.f32.mrb[22].mxu0  ;;  %v1517_v30 = vmul.f32 -1.442695, %v1134_v61  ;;  %v1779_v33 = vpop.eup %1778  ;;  %v1174_v36 = vadd.f32 1.0, %v1777_v23  ;;  %1790 = vpow2.f32 %v1516_v21  ;;  %v1237_v61 = vld [vmem:[%s2353_s15] sm:$0xff] }
 0x16b   : > { %v1578_v5 = vpop.f32.mrb[23].mxu0  ;;  %1792 = vrcp.f32 %v1198_v24  ;;  %v1175_v40 = vadd.f32 1.0, %v1779_v33 }
 0x16c   : > { %v1042_v7 = vadd.f32 %v1576_v2, %v668_v4  ;;  %v1579_v8 = vadd.f32 %v1578_v5, %v1577_v3  ;;  %v1781_v35 = vpop.eup %1780  ;;  %1794 = vpow2.f32 %v1517_v30  ;;  %v1238_v2 = vld [vmem:[%s2353_s15 + $0x8] sm:$0xff] }
 0x16d   : > { %v1199_v41 = vadd.f32 1.0, %v1781_v35 }
 0x16e   : > { %v1139_v12 = vadd.f32 %v2332_v9, %v1042_v7  ;;  %v1045_v15 = vadd.f32 %v1579_v8, %v673_v10  ;;  %v1783_v39 = vpop.eup %1782 }
 0x16f   : > { %v1785_v46 = vpop.eup %1784  ;;  %v1200_v47 = vadd.f32 1.0, %v1783_v39 }
 0x170   : > { %v1142_v19 = vadd.f32 %v2334_v13, %v1045_v15  ;;  %v1580_v20 = vpop.f32.mrb[24].mxu0  ;;  %v1518_v44 = vmul.f32 -1.442695, %v1139_v12  ;;  %v1176_v54 = vadd.f32 1.0, %v1785_v46 }
 0x171   : > { %v1581_v22 = vpop.f32.mrb[25].mxu0 }
 0x172   : > { %v1582_v14 = vadd.f32 %v1581_v22, %v1580_v20  ;;  %v1583_v26 = vpop.f32.mrb[26].mxu0  ;;  %v1519_v50 = vmul.f32 -1.442695, %v1142_v19  ;;  %v1240_v20 = vld [vmem:[%s2353_s15 + $0x18] sm:$0xff]  ;;  %s1838_s15 = sshll.u32 %s1963_s13, 4  ;;  %s1839_s15 = int_to_ptr.vmem [resolvable:$false] %s1838_s15 }
 0x173   : > { %v1584_v31 = vpop.f32.mrb[27].mxu0  ;;  %s1840_s16 = scalar_lea.vmem %s1839_s15, 1024  ;;  %p1841_p4 = scmp.lt.s32.totalorder %s2379_s27, %s1839_s15 }
 0x174   : > { %v1585_v9 = vadd.f32 %v1584_v31, %v1583_v26  ;;  %v1050_v34 = vadd.f32 %v1582_v14, %v678_v27  ;;  %p1842_p5 = scmp.lt.s32.totalorder %s1840_s16, %s1834_s11 }
 0x176   : > { %v1147_v13 = vadd.f32 %v2338_v28, %v1050_v34  ;;  %v1053_v38 = vadd.f32 %v1585_v9, %v683_v37  ;;  %v688_v28 = vpop.permute.xlu0 %687  ;;  %p1843_p6 = por %p1842_p5, %p1841_p4 }
 0x178   : > { %1796 = vtanh.f32 %v1147_v13  ;;  %v1150_v42 = vadd.f32 %v2342_v32, %v1053_v38  ;;  %v1586_v43 = vpop.f32.mrb[28].mxu0  ;;  %v1787_v32 = vpop.eup %1786  ;;  %p1844_p7 = pnand %p1843_p6, %p1837_p3 }
 0x179   : > { %1798 = vrcp.f32 %v1174_v36  ;;  %v1587_v45 = vpop.f32.mrb[29].mxu0  ;;  %v1789_v56 = vpop.eup %1788 }
 0x17a   : > { %1800 = vtanh.f32 %v1150_v42  ;;  %v1588_v48 = vadd.f32 %v1587_v45, %v1586_v43  ;;  %v1589_v49 = vpop.f32.mrb[30].mxu0  ;;  %v1791_v57 = vpop.eup %1790  ;;  %v1241_v4 = vmul.f32 %v1789_v56, %v1237_v61 }
 0x17b   : > { %1802 = vrcp.f32 %v1175_v40  ;;  %v1590_v51 = vpop.f32.mrb[31].mxu0  ;;  %v1793_v60 = vpop.eup %1792  ;;  %v1221_v3 = vadd.f32 1.0, %v1791_v57 }
 0x17c   : > { %1804 = vrcp.f32 %v1199_v41  ;;  %v1058_v52 = vadd.f32 %v1588_v48, %v688_v28  ;;  %v1591_v53 = vadd.f32 %v1590_v51, %v1589_v49  ;;  %v1795_v0 = vpop.eup %1794  ;;  %v1242_v8 = vmul.f32 %v1793_v60, %v1238_v2 }
 0x17d   : > { %1806 = vpow2.f32 %v1518_v44  ;;  %v1222_v6 = vadd.f32 1.0, %v1795_v0 }
 0x17e   : > { %1808 = vrcp.f32 %v1200_v47  ;;  %v1155_v58 = vadd.f32 %v2336_v25, %v1058_v52  ;;  %v1061_v59 = vadd.f32 %v1591_v53, %v693_v55 }
 0x17f   : > { %1810 = vpow2.f32 %v1519_v50 }
 0x180   : > { %1812 = vtanh.f32 %v1155_v58  ;;  %v1158_v62 = vadd.f32 %v2340_v29, %v1061_v59 }
 0x181   : > { %1814 = vrcp.f32 %v1176_v54 }
 0x182   : > { %v1797_v1 = vpop.eup %1796  ;;  %1816 = vtanh.f32 %v1158_v62 }
 0x183   : > { %v1799_v25 = vpop.eup %1798  ;;  %v1245_v5 = vmul.f32 %v1797_v1, %v1787_v32  ;;  %1818 = vrcp.f32 %v1221_v3 }
 0x184   : > { %v1801_v63 = vpop.eup %1800 }
 0x185   : > { %v1803_v7 = vpop.eup %1802  ;;  %v1249_v11 = vadd.f32 %v1245_v5, %v1241_v4  ;;  %v1246_v10 = vmul.f32 %v1801_v63, %v1799_v25 }
 0x186   : > { %v1805_v29 = vpop.eup %1804 }
 0x187   : > { %v1807_v12 = vpop.eup %1806  ;;  %1820 = vtanh.f32 %v1249_v11  ;;  %1261 = vst [vmem:[%s2360_s17] sm:$0xff] %v1249_v11  ;;  %v1250_v15 = vadd.f32 %v1246_v10, %v1242_v8  ;;  %v1243_v23 = vmul.f32 %v1805_v29, %v1239_v17 }
 0x188   : > { %v1809_v16 = vpop.eup %1808  ;;  %1822 = vrcp.f32 %v1222_v6  ;;  %v1223_v21 = vadd.f32 1.0, %v1807_v12 }
 0x189   : > { %v1811_v18 = vpop.eup %1810  ;;  %1824 = vtanh.f32 %v1250_v15  ;;  %1262 = vst [vmem:[%s2360_s17 + $0x8] sm:$0xff] %v1250_v15  ;;  %v1244_v27 = vmul.f32 %v1809_v16, %v1240_v20 }
 0x18a   : > { %v1813_v19 = vpop.eup %1812  ;;  %v1224_v26 = vadd.f32 1.0, %v1811_v18  ;;  %1826 = vrcp.f32 %v1223_v21 }
 0x18b   : > { %v1815_v22 = vpop.eup %1814  ;;  %v1247_v24 = vmul.f32 %v1813_v19, %v1803_v7 }
 0x18c   : > { %v1817_v14 = vpop.eup %1816 }
 0x18d   : > { %v1251_v30 = vadd.f32 %v1247_v24, %v1243_v23  ;;  %v1248_v31 = vmul.f32 %v1817_v14, %v1815_v22  ;;  %v1819_v9 = vpop.eup %1818 }
 0x18f   : > { %1828 = vtanh.f32 %v1251_v30  ;;  %1263 = vst [vmem:[%s2360_s17 + $0x10] sm:$0xff] %v1251_v30  ;;  %v1252_v33 = vadd.f32 %v1248_v31, %v1244_v27 }
 0x190   : > { %1830 = vrcp.f32 %v1224_v26 }
 0x191   : > { %v1821_v34 = vpop.eup %1820  ;;  %1832 = vtanh.f32 %v1252_v33  ;;  %1264 = vst [vmem:[%s2360_s17 + $0x18] sm:$0xff] %v1252_v33 }
 0x192   : > { %v1823_v35 = vpop.eup %1822  ;;  %v1257_v36 = vmul.f32 %v1821_v34, %v1819_v9 }
 0x193   : > { %1847 = shalt.err (!%p1844_p7)
}
 0x194   : > { %s1848_s17 = scalar_lea.hbm %s2377_s9, 512  ;;  %s1852_s13 = scalar_lea.hbm %s2479_s5, 2048 }
 0x195   : > { %p1849_p10 = scmp.ne.s32.totalorder %s2377_s9, %s1848_s17  ;;  %p1853_p13 = scmp.lt.u32.totalorder %s2377_s9, %s2479_s5 }
 0x196   : > { %p1854_p0 = scmp.lt.u32.totalorder %s1852_s13, %s1848_s17  ;;  %p1856_p2 = scmp.lt.u32.totalorder %s1848_s17, %s2377_s9 }
 0x197   : > { %p1850_p11 = pnand %p1849_p10, %p2058_p8 }
 0x198   : > { %p1855_p1 = por %p1854_p0, %p1853_p13 }
 0x199   : > { %p1851_p12 = pneg %p1850_p11 }
 0x19a   : > { %p1857_p3 = por %p1856_p2, %p1855_p1 }
 0x19c   : > { %p1858_p4 = pnand %p1857_p3, %p1851_p12 }
 0x19e   : > { %1861 = shalt.err (!%p1858_p4)
}
 0x19f   : > { %s2481_s11 = smov 128   ;;  %s1965_s16 = smov 256   ;;  %v1825_v37 = vpop.eup %1824 }
 0x1a0   : > { %s1966_s21 = smov 8   ;;  %v1258_v13 = vmul.f32 %v1825_v37, %v1823_v35  ;;  %s517_s22 = scalar_lea.vmem [#allocation4], %s2349_s14  ;;  %v1827_v38 = vpop.eup %1826 }
 0x1a1   : > { %1636 = dma.vmem_to_hbm [thread:$0]  (%p2058_p8), %s2379_s27, 512, %s2377_s9, %s1275_s10, %s2481_s11, %s1965_s16, %s1966_s21   ;;  %v1829_v39 = vpop.eup %1828 }
 0x1a2   : > { %1265 = vst [vmem:[%s517_s22] sm:$0xff] %v1257_v36  ;;  %1266 = vst [vmem:[%s517_s22 + $0x8] sm:$0xff] %v1258_v13  ;;  %s1289_s17 = sshll.u32 %s517_s22, 4  ;;  %v1831_v40 = vpop.eup %1830  ;;  %v1259_v41 = vmul.f32 %v1829_v39, %v1827_v38  ;;  %s2485_s30 = sshll.u32 %s2366_s26, 7  ;;  %s2417_s17 = int_to_ptr.vmem [resolvable:$true] %s1289_s17 }
 0x1a3   : > { %v1833_v42 = vpop.eup %1832  ;;  %s2415_s27 = scalar_lea.hbm %s2478_s4, %s2485_s30  ;;  %s1270_s14 = scalar_lea.sflag [#allocation5], %s2178_s6 }
 0x1a4   : > { %v1260_v43 = vmul.f32 %v1833_v42, %v1831_v40  ;;  %1267 = vst [vmem:[%s517_s22 + $0x10] sm:$0xff] %v1259_v41  ;;  %s1862_s9 = scalar_lea.vmem %s2417_s17, 512  ;;  %s1967_s10 = smov [#allocation4]  }
 0x1a5   : > { %p1863_p5 = scmp.ne.s32.totalorder %s2417_s17, %s1862_s9  ;;  %s1866_s11 = sshll.u32 %s1967_s10, 4  ;;  %s1867_s11 = int_to_ptr.vmem [resolvable:$false] %s1866_s11 }
 0x1a6   : > { %1268 = vst [vmem:[%s517_s22 + $0x18] sm:$0xff] %v1260_v43  ;;  %s1868_s26 = scalar_lea.vmem %s1867_s11, 1024  ;;  %p1869_p10 = scmp.lt.s32.totalorder %s2417_s17, %s1867_s11 }
 0x1a7   : > { %p1864_p6 = pnand %p1863_p5, %p2058_p8  ;;  %p1870_p11 = scmp.lt.s32.totalorder %s1868_s26, %s1862_s9 }
 0x1a9   : > { %p1865_p7 = pneg %p1864_p6  ;;  %p1871_p12 = por %p1870_p11, %p1869_p10 }
 0x1ab   : > { %p1872_p13 = pnand %p1871_p12, %p1865_p7 }
 0x1ad   : > { %1875 = shalt.err (!%p1872_p13)
}
 0x1ae   : > { %s1876_s22 = scalar_lea.hbm %s2415_s27, 512  ;;  %s1880_s15 = scalar_lea.hbm %s2478_s4, 2048 }
 0x1af   : > { %p1877_p0 = scmp.ne.s32.totalorder %s2415_s27, %s1876_s22  ;;  %p1881_p3 = scmp.lt.u32.totalorder %s2415_s27, %s2478_s4 }
 0x1b0   : > { %p1882_p4 = scmp.lt.u32.totalorder %s1880_s15, %s1876_s22  ;;  %p1884_p6 = scmp.lt.u32.totalorder %s1876_s22, %s2415_s27 }
 0x1b1   : > { %p1878_p1 = pnand %p1877_p0, %p2058_p8 }
 0x1b2   : > { %p1883_p5 = por %p1882_p4, %p1881_p3 }
 0x1b3   : > { %p1879_p2 = pneg %p1878_p1 }
 0x1b4   : > { %p1885_p7 = por %p1884_p6, %p1883_p5 }
 0x1b6   : > { %p1886_p10 = pnand %p1885_p7, %p1879_p2 }
 0x1b8   : > { %1889 = shalt.err (!%p1886_p10)
}
 0x1b9   : > { %s2486_s9 = smov 128  }
 0x1ba   : > { %1635 = dma.vmem_to_hbm [thread:$0]  (%p2058_p8), %s2417_s17, 512, %s2415_s27, %s1270_s14, %s2486_s9, %s1965_s16, %s1966_s21  }
 0x1bb PF: > { %p1646_p11 = scmp.ge.s32.totalorder %s1960_s25, 2  ;;  %s1321_s26 = sand.u32 1, %s1932_s18  }
 0x1bc   : > { %s1322_s22 = scalar_lea.sflag [#allocation5], %s1321_s26 }
 0x1bd   : > { %p1640_p12 = pnand %p1646_p11, %p2062_p9 }
 0x1bf   : > { %1923 = dma.done.wait (!%p1640_p12), %s1322_s22, 512  }
 0x1c0   : > { %1925 = vsyncadd (!%p1640_p12), %s1322_s22, 4294966784  ;;  %s1331_s7 = scalar_lea.sflag [#allocation7], %s1321_s26 }
 0x1c1   : > { %1927 = dma.done.wait (!%p1640_p12), %s1331_s7, 512  }
 0x1c2   : > { %1929 = vsyncadd (!%p1640_p12), %s1331_s7, 4294966784  ;;  %s22_s25 = sadd.s32 1, %s1960_s25   ;;  %s2487_s18 = smov %s1936_s19 }
 0x1c3   : > { %p19_p13 = scmp.ge.s32.totalorder %s22_s25, 6   ;;  %s2488_s19 = smov %s1940_s20 }
 0x1c4   : > { %s2489_s20 = smov %s2070_s12  ;;  %s2490_s21 = smov %s1952_s23 }
 0x1c5   : > { %s2491_s22 = smov %s1956_s24  ;;  %s2492_s23 = smov %s2495_s28 }
 0x1c6   : > { %s2493_s24 = smov %s2499_s29  ;;  %21 = sbr.rel (!%p19_p13) target bundleno = 7 (0x7), region = 180 }
 0x1cd   :  { %1336 = vsyncpa [#allocation5], 1 }
 0x1ce   :  { %1338 = vsyncpa [#allocation5 + $0x1], 1 }
 0x1cf   :  { %1339 = vsyncpa [#allocation7], 1 }
 0x1d0   :  { %1341 = vsyncpa [#allocation7 + $0x1], 1 }

</bundles_post_ra>
